<compile_context>
chip_gen: v6e
topology: v6e:2x2x1
jax: 0.10.0
libtpu: 0.0.40
codegen_flags: <defaults>
</compile_context>

<pallas_src>
import jax
import jax.numpy as jnp
from jax.experimental import pallas as pl
from jax.experimental.pallas import tpu as pltpu


def _round_up(n: int, m: int) -> int:
    return ((n + m - 1) // m) * m


def _pad2d(a, rows: int, cols: int):
    return jnp.pad(a, ((0, rows - a.shape[0]), (0, cols - a.shape[1])))


def _make_kernel(num_hidden: int, output_layer: bool):
    """Fused MLP kernel; activations are (features, batch_tile), batch on lanes.

    Ref order:
      x (F_pad, TB) bf16,
      per hidden layer: W (Eout_pad, Ein_pad) bf16,
                        ss (Eout_pad, 2) f32  (col 0 = BN scale, col 1 = shift),
      if output_layer:  wo (Elast_pad, 1) f32, bo (1,) f32 in SMEM,
      out (1, TB) f32  or  (TB, Elast_pad) f32.
    """

    def kernel(*refs):
        x_ref = refs[0]
        out_ref = refs[-1]
        idx = 1
        hb = x_ref[...]                          # bf16 (features, TB)
        if num_hidden == 0:
            h = hb.astype(jnp.float32)           # only needed without hidden layers
        for l in range(num_hidden):
            w_ref, ss_ref = refs[idx], refs[idx + 1]
            idx += 2
            # bf16 MXU matmul, f32 accumulation.
            z = jnp.dot(w_ref[...], hb, preferred_element_type=jnp.float32)
            scale = ss_ref[:, 0:1]               # (Eout_pad, 1) f32
            shift = ss_ref[:, 1:2]               # (Eout_pad, 1) f32
            # Linear-bias + BatchNorm(eval) + ReLU, all f32 on the VPU.
            h = jnp.maximum(z * scale + shift, 0.0)
            if l + 1 < num_hidden:
                hb = h.astype(jnp.bfloat16)       # bf16 only at matmul inputs
            # Dropout(p) in eval mode == identity
        if output_layer:
            wo_ref, bo_ref = refs[idx], refs[idx + 1]
            # Linear(., 1) as VPU mul + sublane reduce -> lane-dense (1, TB).
            out_ref[...] = (jnp.sum(h * wo_ref[...], axis=0, keepdims=True)
                            + bo_ref[0]).astype(out_ref.dtype)
        else:
            # Batch-major store so the wrapper needs no HBM->HBM transpose.
            out_ref[...] = h.T.astype(out_ref.dtype)

    return kernel


def _vmem_budget_bytes(pads, tb, output_layer):
    """Estimate resident VMEM and return a budget with headroom."""
    resident = 0
    for l in range(len(pads) - 1):
        resident += pads[l + 1] * pads[l] * 2        # bf16 weight, Buffered(1)
        resident += pads[l + 1] * 128 * 4            # scale/shift, lane-padded
    resident += pads[0] * tb * 2 * 2                 # x tile, double-buffered
    p_max = max(pads)
    resident += p_max * tb * 4 * 2 + p_max * tb * 2  # live f32 acts + bf16 copy
    if output_layer:
        resident += pads[-1] * 128 * 4               # wo, lane-padded
        resident += tb * 4 * 2                       # (1, tb) out, double-buffered
    else:
        resident += tb * pads[-1] * 4 * 2
    return resident * 2 + (4 << 20)                  # 2x headroom + compiler scratch


def deep_network_forward(x, params, output_layer=True, block_batch=256):
    """Eval-mode Deep_NetWork forward via a fused Pallas kernel.

    params:
      'hidden': list of dicts {w (out,in), b (out,), gamma, beta, mean, var}
      'out':    dict {w (1,in), b (1,)}   (if output_layer)
    """
    eps = 1e-5
    batch, in_dim = x.shape
    # Clamp the batch tile so tiny batches don't over-pad; keep it 128-aligned.
    tb = min(block_batch, _round_up(batch, 128))
    b_pad = _round_up(batch, tb)

    dims = [in_dim] + [layer["w"].shape[0] for layer in params["hidden"]]
    pads = [_round_up(d, 128) for d in dims]

    # x^T (batch on lanes), zero-padded, bf16 for the MXU.
    x_t = _pad2d(x.T, pads[0], b_pad).astype(jnp.bfloat16)

    flat_inputs = [x_t]
    in_specs = [pl.BlockSpec((pads[0], tb), lambda i: (0, i))]

    num_hidden = len(params["hidden"])
    for l, layer in enumerate(params["hidden"]):
        p_in, p_out = pads[l], pads[l + 1]
        scale = layer["gamma"] / jnp.sqrt(layer["var"] + eps)
        shift = (layer["b"] - layer["mean"]) * scale + layer["beta"]
        # Raw Linear weight in bf16 (no scale folding -> no bf16 range risk);
        # the per-row BN scale is applied in the f32 epilogue instead.
        flat_inputs.append(_pad2d(layer["w"], p_out, p_in).astype(jnp.bfloat16))
        ss = jnp.stack([scale, shift], axis=1).astype(jnp.float32)   # (out, 2)
        flat_inputs.append(_pad2d(ss, p_out, 2))
        # Constant index_maps + Buffered(1): weights stay VMEM-resident with a
        # single copy (no pointless double-buffering of constant blocks).
        in_specs.append(pl.BlockSpec((p_out, p_in), lambda i: (0, 0),
                                     pipeline_mode=pl.Buffered(1)))
        in_specs.append(pl.BlockSpec((p_out, 2), lambda i: (0, 0),
                                     pipeline_mode=pl.Buffered(1)))

    p_last = pads[-1]
    if output_layer:
        wo = _pad2d(params["out"]["w"].T, p_last, 1).astype(jnp.float32)
        bo = params["out"]["b"].astype(jnp.float32)            # (1,) scalar
        flat_inputs += [wo, bo]
        in_specs += [pl.BlockSpec((p_last, 1), lambda i: (0, 0),
                                  pipeline_mode=pl.Buffered(1)),
                     pl.BlockSpec(memory_space=pltpu.MemorySpace.SMEM)]
        out_shape = jax.ShapeDtypeStruct((1, b_pad), jnp.float32)
        out_spec = pl.BlockSpec((1, tb), lambda i: (0, i))
    else:
        out_shape = jax.ShapeDtypeStruct((b_pad, p_last), jnp.float32)
        out_spec = pl.BlockSpec((tb, p_last), lambda i: (i, 0))

    kernel = _make_kernel(num_hidden, output_layer)

    # --- VMEM budget: computed from actual residency, capped at physical. ---
    budget = _vmem_budget_bytes(pads, tb, output_layer)
    try:
        phys = int(pltpu.get_tpu_info().vmem_capacity_bytes)
        cap = max(int(phys * 0.75), 32 << 20)
    except Exception:  # conservative cap if the query is unavailable
        cap = 48 << 20
    vmem_limit = int(min(max(budget, 32 << 20), cap))

    # --- Advisory cost estimate for the XLA scheduler. ---
    flops = 0
    for l in range(num_hidden):
        flops += 2 * pads[l + 1] * pads[l] * b_pad
    if output_layer:
        flops += 2 * p_last * b_pad
    bytes_acc = sum(int(a.size) * a.dtype.itemsize for a in flat_inputs)
    bytes_acc += int(out_shape.size) * 4

    out = pl.pallas_call(
        kernel,
        out_shape=out_shape,
        grid=(b_pad // tb,),
        in_specs=in_specs,
        out_specs=out_spec,
        compiler_params=pltpu.CompilerParams(
            dimension_semantics=("parallel",),
            vmem_limit_bytes=vmem_limit),
        cost_estimate=pl.CostEstimate(flops=int(flops), transcendentals=0,
                                      bytes_accessed=int(bytes_acc)),
    )(*flat_inputs)

    if output_layer:
        return out[0, :batch].reshape(batch, 1)
    return out[:batch, :dims[-1]]          # batch-major already, plain slice


def init_params(key, input_dim, embed_dims, output_layer=True):
    """Deterministic parameter init mimicking the PyTorch module's shapes."""
    params = {"hidden": [], "out": None}
    in_dim = input_dim
    for embed_dim in embed_dims:
        key, kw, kb, kg, kbeta, km, kv = jax.random.split(key, 7)
        bound = 1.0 / jnp.sqrt(jnp.float32(in_dim))
        # nn.Linear weight layout: (out, in).
        w = jax.random.uniform(kw, (embed_dim, in_dim), jnp.float32, -bound, bound)
        b = jax.random.uniform(kb, (embed_dim,), jnp.float32, -bound, bound)
        gamma = 1.0 + 0.1 * jax.random.normal(kg, (embed_dim,), jnp.float32)
        beta = 0.1 * jax.random.normal(kbeta, (embed_dim,), jnp.float32)
        mean = 0.1 * jax.random.normal(km, (embed_dim,), jnp.float32)
        var = jnp.abs(1.0 + 0.1 * jax.random.normal(kv, (embed_dim,), jnp.float32))
        params["hidden"].append(
            dict(w=w, b=b, gamma=gamma, beta=beta, mean=mean, var=var))
        in_dim = embed_dim
    if output_layer:
        key, kw, kb = jax.random.split(key, 3)
        bound = 1.0 / jnp.sqrt(jnp.float32(in_dim))
        wo = jax.random.uniform(kw, (1, in_dim), jnp.float32, -bound, bound)
        bo = jax.random.uniform(kb, (1,), jnp.float32, -bound, bound)
        params["out"] = dict(w=wo, b=bo)
    return params


def reference_forward(x, params, output_layer=True):
    """Pure-JAX f32 reference (same eval-mode semantics)."""
    eps = 1e-5
    h = x
    for layer in params["hidden"]:
        h = h @ layer["w"].T + layer["b"]
        h = (h - layer["mean"]) / jnp.sqrt(layer["var"] + eps)
        h = h * layer["gamma"] + layer["beta"]
        h = jnp.maximum(h, 0.0)
    if output_layer:
        h = h @ params["out"]["w"].T + params["out"]["b"]
    return h


if __name__ == "__main__":
    key = jax.random.PRNGKey(0)
    key, kx, kp = jax.random.split(key, 3)

    batch = 8
    input_dim = 16
    embed_dims = (32, 16)
    dropout = 0.2  # identity in eval-mode forward

    x = jax.random.normal(kx, (batch, input_dim), jnp.float32)
    params = init_params(kp, input_dim, embed_dims, output_layer=True)

    out = deep_network_forward(x, params, output_layer=True)
    out = jax.block_until_ready(out)

    ref = reference_forward(x, params, output_layer=True)
    assert out.shape == (batch, 1), out.shape
    # bf16 MXU operands -> loosened tolerance vs the f32 reference.
    assert jnp.allclose(out, ref, atol=5e-2, rtol=5e-2), (out, ref)

    print("KERNEL_OK")
</pallas_src>

<mosaic_0001>
module attributes {stable_mosaic.version = 11 : i64} {
  func.func @kernel(%arg0: i32, %arg1: memref<128x128xbf16, #tpu.memory_space<vmem>>, %arg2: memref<128x128xbf16, #tpu.memory_space<vmem>>, %arg3: memref<128x2xf32, #tpu.memory_space<vmem>>, %arg4: memref<128x128xbf16, #tpu.memory_space<vmem>>, %arg5: memref<128x2xf32, #tpu.memory_space<vmem>>, %arg6: memref<128x1xf32, #tpu.memory_space<vmem>>, %arg7: memref<1xf32, #tpu.memory_space<smem>>, %arg8: memref<1x128xf32, #tpu.memory_space<vmem>>) attributes {dimension_semantics = [#tpu.dimension_semantics<parallel>], iteration_bounds = array<i64: 1>, scalar_prefetch = 0 : i64, scratch_operands = 0 : i64, tpu.core_type = #tpu.core_type<tc>, window_params = [{transform_indices = @transform_0, window_bounds = array<i64: 128, 128>}, {pipeline_mode = #tpu.pipeline_mode<synchronous>, transform_indices = @transform_1, window_bounds = array<i64: 128, 128>}, {pipeline_mode = #tpu.pipeline_mode<synchronous>, transform_indices = @transform_2, window_bounds = array<i64: 128, 2>}, {pipeline_mode = #tpu.pipeline_mode<synchronous>, transform_indices = @transform_3, window_bounds = array<i64: 128, 128>}, {pipeline_mode = #tpu.pipeline_mode<synchronous>, transform_indices = @transform_4, window_bounds = array<i64: 128, 2>}, {pipeline_mode = #tpu.pipeline_mode<synchronous>, transform_indices = @transform_5, window_bounds = array<i64: 128, 1>}, {transform_indices = @transform_6, window_bounds = array<i64: 1>}, {transform_indices = @transform_7, window_bounds = array<i64: 1, 128>}]} {
    %c0 = arith.constant 0 : index
    %c0_0 = arith.constant 0 : index
    %0 = vector.load %arg1[%c0, %c0_0] : memref<128x128xbf16, #tpu.memory_space<vmem>>, vector<128x128xbf16>
    %c0_1 = arith.constant 0 : index
    %c0_2 = arith.constant 0 : index
    %1 = vector.load %arg2[%c0_1, %c0_2] : memref<128x128xbf16, #tpu.memory_space<vmem>>, vector<128x128xbf16>
    %cst = arith.constant dense<0.000000e+00> : vector<128x128xf32>
    %2 = tpu.matmul %1, %0, %cst {dimension_numbers = #tpu.dot_dimension_numbers<[1], [0], [0], [1], [0, 0, 1, 1], [], []>} : vector<128x128xbf16>, vector<128x128xbf16>, vector<128x128xf32> -> vector<128x128xf32>
    %c0_3 = arith.constant 0 : index
    %c0_4 = arith.constant 0 : index
    %3 = vector.load %arg3[%c0_3, %c0_4] : memref<128x2xf32, #tpu.memory_space<vmem>>, vector<128x1xf32>
    %c0_5 = arith.constant 0 : index
    %c1 = arith.constant 1 : index
    %4 = vector.load %arg3[%c0_5, %c1] : memref<128x2xf32, #tpu.memory_space<vmem>>, vector<128x1xf32>
    %5 = vector.broadcast %3 : vector<128x1xf32> to vector<128x128xf32>
    %6 = arith.mulf %2, %5 : vector<128x128xf32>
    %7 = vector.broadcast %4 : vector<128x1xf32> to vector<128x128xf32>
    %8 = arith.addf %6, %7 : vector<128x128xf32>
    %cst_6 = arith.constant 0.000000e+00 : f32
    %9 = vector.broadcast %cst_6 : f32 to vector<128x128xf32>
    %10 = arith.maximumf %8, %9 : vector<128x128xf32>
    %11 = arith.truncf %10 : vector<128x128xf32> to vector<128x128xbf16>
    %c0_7 = arith.constant 0 : index
    %c0_8 = arith.constant 0 : index
    %12 = vector.load %arg4[%c0_7, %c0_8] : memref<128x128xbf16, #tpu.memory_space<vmem>>, vector<128x128xbf16>
    %cst_9 = arith.constant dense<0.000000e+00> : vector<128x128xf32>
    %13 = tpu.matmul %12, %11, %cst_9 {dimension_numbers = #tpu.dot_dimension_numbers<[1], [0], [0], [1], [0, 0, 1, 1], [], []>} : vector<128x128xbf16>, vector<128x128xbf16>, vector<128x128xf32> -> vector<128x128xf32>
    %c0_10 = arith.constant 0 : index
    %c0_11 = arith.constant 0 : index
    %14 = vector.load %arg5[%c0_10, %c0_11] : memref<128x2xf32, #tpu.memory_space<vmem>>, vector<128x1xf32>
    %c0_12 = arith.constant 0 : index
    %c1_13 = arith.constant 1 : index
    %15 = vector.load %arg5[%c0_12, %c1_13] : memref<128x2xf32, #tpu.memory_space<vmem>>, vector<128x1xf32>
    %16 = vector.broadcast %14 : vector<128x1xf32> to vector<128x128xf32>
    %17 = arith.mulf %13, %16 : vector<128x128xf32>
    %18 = vector.broadcast %15 : vector<128x1xf32> to vector<128x128xf32>
    %19 = arith.addf %17, %18 : vector<128x128xf32>
    %cst_14 = arith.constant 0.000000e+00 : f32
    %20 = vector.broadcast %cst_14 : f32 to vector<128x128xf32>
    %21 = arith.maximumf %19, %20 : vector<128x128xf32>
    %c0_15 = arith.constant 0 : index
    %c0_16 = arith.constant 0 : index
    %22 = vector.load %arg6[%c0_15, %c0_16] : memref<128x1xf32, #tpu.memory_space<vmem>>, vector<128x1xf32>
    %23 = vector.broadcast %22 : vector<128x1xf32> to vector<128x128xf32>
    %24 = arith.mulf %21, %23 : vector<128x128xf32>
    %cst_17 = arith.constant dense<0.000000e+00> : vector<128xf32>
    %25 = vector.multi_reduction <add>, %24, %cst_17 [0] : vector<128x128xf32> to vector<128xf32>
    %26 = vector.shape_cast %25 : vector<128xf32> to vector<1x128xf32>
    %c0_18 = arith.constant 0 : index
    %27 = memref.load %arg7[%c0_18] : memref<1xf32, #tpu.memory_space<smem>>
    %28 = vector.broadcast %27 : f32 to vector<1x128xf32>
    %29 = arith.addf %26, %28 : vector<1x128xf32>
    %c0_19 = arith.constant 0 : index
    %c0_20 = arith.constant 0 : index
    %30 = vector.load %arg8[%c0_19, %c0_20] : memref<1x128xf32, #tpu.memory_space<vmem>>, vector<1x128xf32>
    tpu.vector_store %arg8[%c0_19, %c0_20], %29 {strides = array<i32>} : memref<1x128xf32, #tpu.memory_space<vmem>>, vector<1x128xf32>,
    return
  }
  func.func @transform_0(%arg0: i32) -> (i32, i32) {
    %c0_i32 = arith.constant 0 : i32
    %c0_i32_0 = arith.constant 0 : i32
    return %c0_i32, %arg0 : i32, i32
  }
  func.func @transform_1(%arg0: i32) -> (i32, i32) {
    %c0_i32 = arith.constant 0 : i32
    %c0_i32_0 = arith.constant 0 : i32
    %c0_i32_1 = arith.constant 0 : i32
    return %c0_i32, %c0_i32_0 : i32, i32
  }
  func.func @transform_2(%arg0: i32) -> (i32, i32) {
    %c0_i32 = arith.constant 0 : i32
    %c0_i32_0 = arith.constant 0 : i32
    %c0_i32_1 = arith.constant 0 : i32
    return %c0_i32, %c0_i32_0 : i32, i32
  }
  func.func @transform_3(%arg0: i32) -> (i32, i32) {
    %c0_i32 = arith.constant 0 : i32
    %c0_i32_0 = arith.constant 0 : i32
    %c0_i32_1 = arith.constant 0 : i32
    return %c0_i32, %c0_i32_0 : i32, i32
  }
  func.func @transform_4(%arg0: i32) -> (i32, i32) {
    %c0_i32 = arith.constant 0 : i32
    %c0_i32_0 = arith.constant 0 : i32
    %c0_i32_1 = arith.constant 0 : i32
    return %c0_i32, %c0_i32_0 : i32, i32
  }
  func.func @transform_5(%arg0: i32) -> (i32, i32) {
    %c0_i32 = arith.constant 0 : i32
    %c0_i32_0 = arith.constant 0 : i32
    %c0_i32_1 = arith.constant 0 : i32
    return %c0_i32, %c0_i32_0 : i32, i32
  }
  func.func @transform_6(%arg0: i32) -> i32 {
    %c0_i32 = arith.constant 0 : i32
    %c0_i32_0 = arith.constant 0 : i32
    return %c0_i32 : i32
  }
  func.func @transform_7(%arg0: i32) -> (i32, i32) {
    %c0_i32 = arith.constant 0 : i32
    %c0_i32_0 = arith.constant 0 : i32
    return %c0_i32, %arg0 : i32, i32
  }
}

</mosaic_0001>

<bundles_post_ra>
// kernel: tpu_custom_call.1
= control target key start
LH: loop header
LB: loop body
LE: loop exit
PB: predicated region body
PF: predicated region fallthrough
CT: control target
= control target key end

     0   :  { %v1191_v2 = vmov 1   ;;  %v1192_v10 = vmov 0   ;;  %s1628_s0 = inlined_call_operand.vmem [shape: bf16[128,128], index: 0, kind: input, shape index: {}]   ;;  %s1629_s1 = inlined_call_operand.vmem [shape: bf16[128,128], index: 1, kind: input, shape index: {}]   ;;  %s1630_s2 = inlined_call_operand.vmem [shape: f32[128,2], index: 2, kind: input, shape index: {}]   ;;  %s1631_s3 = inlined_call_operand.vmem [shape: bf16[128,128], index: 3, kind: input, shape index: {}]   ;;  %s1632_s4 = inlined_call_operand.vmem [shape: f32[128,2], index: 4, kind: input, shape index: {}]   ;;  %s1633_s5 = inlined_call_operand.vmem [shape: f32[128,1], index: 5, kind: input, shape index: {}]   ;;  %s1634_s6 = inlined_call_operand.<no memory space> [shape: f32[1], index: 6, kind: input, shape index: {}]   ;;  %s1635_s7 = inlined_call_operand.hbm [shape: f32[1,128], index: 7, kind: output, shape index: {}]  }
   0x1   :  { %v1145_v0 = vld [vmem:[%s1628_s0 + $0x38] sm:$0xff]   ;;  %v1146_v1 = vld [vmem:[%s1628_s0 + $0x30] sm:$0xff]   ;;  %1113 = vset.pattern.permute.xlu1 %v1191_v2  ;;  %1115 = vset.pattern.permute.xlu0 %v1191_v2  ;;  %v1147_v3 = vld [vmem:[%s1628_s0 + $0x28] sm:$0xff]  }
   0x2   :  { %1046 = vmatprep.subr.bf16.mxu0 %v1145_v0  ;;  %v268_v4 = vld [vmem:[%s1630_s2 + $0x70] sm:$0xff]  ;;  %v1148_v5 = vld [vmem:[%s1628_s0 + $0x20] sm:$0xff]   ;;  %v269_v6 = vld [vmem:[%s1630_s2 + $0x78] sm:$0xff] }
   0x3   :  { %1047 = vmatpush3.bf16.msra.mxu0 %v1145_v0  ;;  %423 = vperm.xlu1 %1113, %v268_v4   ;;  %v1153_v7 = vld [vmem:[%s1629_s1] sm:$0xff]   ;;  %v1149_v8 = vld [vmem:[%s1628_s0 + $0x18] sm:$0xff]   ;;  %v267_v9 = vld [vmem:[%s1630_s2 + $0x68] sm:$0xff] }
   0x4   :  { %1048 = vmatprep.subr.bf16.mxu0 %v1146_v1  ;;  %1062 = vmatprep.mubr.bf16.mxu0 %v1153_v7  ;;  %v266_v11 = vld [vmem:[%s1630_s2 + $0x60] sm:$0xff]  ;;  %v1150_v12 = vld [vmem:[%s1628_s0 + $0x10] sm:$0xff]   ;;  %v1151_v14 = vld [vmem:[%s1628_s0 + $0x8] sm:$0xff]  }
   0x5   :  { %415 = vperm.xlu0 %1115, %v266_v11   ;;  %v262_v13 = vld [vmem:[%s1630_s2 + $0x40] sm:$0xff]  ;;  %v264_v15 = vld [vmem:[%s1630_s2 + $0x50] sm:$0xff] }
   0x6   :  { %v258_v16 = vld [vmem:[%s1630_s2 + $0x20] sm:$0xff] }
   0x7   :  { %1049 = vmatpush3.bf16.msra.mxu0 %v1146_v1  ;;  %427 = vperm.xlu1 %1113, %v269_v6   ;;  %v1152_v17 = vld [vmem:[%s1628_s0] sm:$0xff]  }
   0x8   :  { %1050 = vmatprep.subr.bf16.mxu0 %v1147_v3 }
   0x9   :  { %399 = vperm.xlu0 %1115, %v262_v13  }
   0xb   :  { %1051 = vmatpush3.bf16.msra.mxu0 %v1147_v3  ;;  %1114 = vset.pattern.permute.xlu1 %v1192_v10 }
   0xc   :  { %1052 = vmatprep.subr.bf16.mxu0 %v1148_v5  ;;  %337 = vperm.xlu1 %1114, %v267_v9  }
   0xd   :  { %383 = vperm.xlu0 %1115, %v258_v16  }
   0xf   :  { %1053 = vmatpush3.bf16.msra.mxu0 %v1148_v5 }
  0x10   :  { %1054 = vmatprep.subr.bf16.mxu0 %v1149_v8  ;;  %1116 = vset.pattern.permute.xlu1 %v1191_v2 }
  0x11   :  { %419 = vperm.xlu1 %1116, %v267_v9  }
  0x13   :  { %1055 = vmatpush3.bf16.msra.mxu0 %v1149_v8 }
  0x14   :  { %1056 = vmatprep.subr.bf16.mxu0 %v1150_v12 }
  0x15   :  { %1117 = vset.pattern.permute.xlu1 %v1192_v10 }
  0x16   :  { %322 = vperm.xlu1 %1117, %v264_v15  }
  0x17   :  { %1057 = vmatpush3.bf16.msra.mxu0 %v1150_v12 }
  0x18   :  { %1058 = vmatprep.subr.bf16.mxu0 %v1151_v14 }
  0x19   :  { %13 = vsyncpa [#allocation4], 0  ;;  %1124 = vset.pattern.permute.xlu0 %v1192_v10  ;;  %v1154_v18 = vld [vmem:[%s1629_s1 + $0x8] sm:$0xff]   ;;  %v1155_v19 = vld [vmem:[%s1629_s1 + $0x10] sm:$0xff]   ;;  %s1193_s16 = smov [#allocation3]  }
  0x1a   :  { %1118 = vset.pattern.permute.xlu1 %v1191_v2  ;;  %342 = vperm.xlu0 %1124, %v268_v4   ;;  %v265_v20 = vld [vmem:[%s1630_s2 + $0x58] sm:$0xff]  ;;  %v263_v21 = vld [vmem:[%s1630_s2 + $0x48] sm:$0xff]  ;;  %v1157_v23 = vld [vmem:[%s1629_s1 + $0x20] sm:$0xff]   ;;  %s982_s17 = sshll.u32 %s1193_s16, 4  ;;  %s983_s17 = int_to_ptr.vmem [resolvable:$true] %s982_s17 }
  0x1b   :  { %1059 = vmatpush3.bf16.msra.mxu0 %v1151_v14  ;;  %407 = vperm.xlu1 %1118, %v264_v15   ;;  %v1156_v22 = vld [vmem:[%s1629_s1 + $0x18] sm:$0xff]   ;;  %v1158_v24 = vld [vmem:[%s1629_s1 + $0x28] sm:$0xff]   ;;  %v1159_v25 = vld [vmem:[%s1629_s1 + $0x30] sm:$0xff]   ;;  %s1169_s18 = scalar_lea.vmem %s983_s17, 16  ;;  %s1173_s19 = scalar_lea.vmem %s983_s17, 32 }
  0x1c   :  { %1060 = vmatprep.subr.bf16.mxu0 %v1152_v17  ;;  %v260_v26 = vld [vmem:[%s1630_s2 + $0x30] sm:$0xff]  ;;  %v261_v27 = vld [vmem:[%s1630_s2 + $0x38] sm:$0xff]  ;;  %v254_v30 = vld [vmem:[%s1630_s2] sm:$0xff]  ;;  %p1170_p0 = scmp.ne.s32.totalorder %s983_s17, %s1169_s18  ;;  %p1174_p1 = scmp.lt.s32.totalorder %s983_s17, %s983_s17 }
  0x1d   :  { %v1160_v28 = vld [vmem:[%s1629_s1 + $0x38] sm:$0xff]   ;;  %v259_v31 = vld [vmem:[%s1630_s2 + $0x28] sm:$0xff]  ;;  %v256_v32 = vld [vmem:[%s1630_s2 + $0x10] sm:$0xff]  ;;  %p1175_p2 = scmp.lt.s32.totalorder %s1173_s19, %s1169_s18 }
  0x1e   :  { %347 = vperm.xlu0 %1124, %v269_v6   ;;  %v257_v29 = vld [vmem:[%s1630_s2 + $0x18] sm:$0xff]  ;;  %v255_v33 = vld [vmem:[%s1630_s2 + $0x8] sm:$0xff]  ;;  %v631_v34 = vld [vmem:[%s1632_s4] sm:$0xff] }
  0x1f   :  { %1061 = vmatpush3.bf16.msra.mxu0 %v1152_v17  ;;  %411 = vperm.xlu1 %1118, %v265_v20   ;;  %v633_v35 = vld [vmem:[%s1632_s4 + $0x10] sm:$0xff]  ;;  %v634_v36 = vld [vmem:[%s1632_s4 + $0x18] sm:$0xff]  ;;  %v636_v37 = vld [vmem:[%s1632_s4 + $0x28] sm:$0xff]  ;;  %p1176_p3 = por %p1175_p2, %p1174_p1 }
  0x20   :  { %v638_v38 = vld [vmem:[%s1632_s4 + $0x38] sm:$0xff]  ;;  %v1368_v39 = vld [vmem:[%s1632_s4 + $0x48] sm:$0xff]  ;;  %v635_v44 = vld [vmem:[%s1632_s4 + $0x20] sm:$0xff] }
  0x21   :  { %v1374_v40 = vld [vmem:[%s1632_s4 + $0x58] sm:$0xff]  ;;  %v1380_v41 = vld [vmem:[%s1632_s4 + $0x68] sm:$0xff]  ;;  %v1161_v45 = vld [vmem:[%s1631_s3] sm:$0xff]   ;;  %p1177_p4 = pnand %p1176_p3, %p1170_p0 }
  0x22   :  { %1063 = vmatmul.mubr.bf16.vlgmr.msra.gmra.mxu0 %v1154_v18  ;;  %332 = vperm.xlu0 %1124, %v266_v11   ;;  %v1386_v42 = vld [vmem:[%s1632_s4 + $0x78] sm:$0xff]  ;;  %v632_v43 = vld [vmem:[%s1632_s4 + $0x8] sm:$0xff]  ;;  %v637_v46 = vld [vmem:[%s1632_s4 + $0x30] sm:$0xff] }
  0x23   :  { %1066 = vmatprep.mubr.bf16.mxu0 %v1155_v19  ;;  %1119 = vset.pattern.permute.xlu1 %v1192_v10  ;;  %v639_v47 = vld [vmem:[%s1632_s4 + $0x40] sm:$0xff]  ;;  %v641_v49 = vld [vmem:[%s1632_s4 + $0x50] sm:$0xff]  ;;  %v840_v57 = vld [vmem:[%s1633_s5 + $0x8] sm:$0xff] }
  0x24   :  { %317 = vperm.xlu1 %1119, %v263_v21   ;;  %1094 = vmatprep.mubr.bf16.mxu1 %v1161_v45  ;;  %v1416_v51 = vld [vmem:[%s1632_s4 + $0x60] sm:$0xff]  ;;  %v645_v52 = vld [vmem:[%s1632_s4 + $0x70] sm:$0xff]  ;;  %v846_v58 = vld [vmem:[%s1633_s5 + $0x38] sm:$0xff] }
  0x25   :  { %v839_v54 = vld [vmem:[%s1633_s5] sm:$0xff]  ;;  %v841_v60 = vld [vmem:[%s1633_s5 + $0x10] sm:$0xff]  ;;  %v842_v62 = vld [vmem:[%s1633_s5 + $0x18] sm:$0xff] }
  0x26   :  { %327 = vperm.xlu0 %1124, %v265_v20   ;;  %v843_v56 = vld [vmem:[%s1633_s5 + $0x20] sm:$0xff]  ;;  %v849_v61 = vld [vmem:[%s1633_s5 + $0x50] sm:$0xff]  ;;  %v844_v4 = vld [vmem:[%s1633_s5 + $0x28] sm:$0xff] }
  0x27   :  { %v845_v6 = vld [vmem:[%s1633_s5 + $0x30] sm:$0xff]  ;;  %v852_v12 = vld [vmem:[%s1633_s5 + $0x68] sm:$0xff] }
  0x28   :  { %1120 = vset.pattern.permute.xlu1 %v1191_v2  ;;  %v848_v20 = vld [vmem:[%s1633_s5 + $0x48] sm:$0xff] }
  0x29   :  { %403 = vperm.xlu1 %1120, %v263_v21  }
  0x2a   :  { %1067 = vmatmul.mubr.bf16.gmra.mxu0 %v1156_v22  ;;  %312 = vperm.xlu0 %1124, %v262_v13  }
  0x2b   :  { %1070 = vmatprep.mubr.bf16.mxu0 %v1157_v23 }
  0x2d   :  { %1121 = vset.pattern.permute.xlu1 %v1192_v10 }
  0x2e   :  { %302 = vperm.xlu1 %1121, %v260_v26   ;;  %307 = vperm.xlu0 %1124, %v261_v27  }
  0x32   :  { %1071 = vmatmul.mubr.bf16.gmra.mxu0 %v1158_v24  ;;  %1122 = vset.pattern.permute.xlu1 %v1191_v2 }
  0x33   :  { %1074 = vmatprep.mubr.bf16.mxu0 %v1159_v25  ;;  %391 = vperm.xlu1 %1122, %v260_v26  }
  0x34   :  { %292 = vperm.xlu0 %1124, %v258_v16   ;;  %v847_v16 = vld [vmem:[%s1633_s5 + $0x40] sm:$0xff] }
  0x37   :  { %395 = vperm.xlu1 %1122, %v261_v27  }
  0x38   :  { %287 = vperm.xlu0 %1124, %v257_v29  }
  0x3a   :  { %1075 = vmatmul.mubr.bf16.gmra.mxu0 %v1160_v28 }
  0x3b   :  { %1123 = vset.pattern.permute.xlu1 %v1192_v10 }
  0x3c   :  { %272 = vperm.xlu0 %1124, %v254_v30   ;;  %297 = vperm.xlu1 %1123, %v259_v31  }
  0x40   :  { %1129 = vset.pattern.permute.xlu0 %v1191_v2  ;;  %1125 = vset.pattern.permute.xlu1 %v1191_v2 }
  0x41   :  { %367 = vperm.xlu0 %1129, %v254_v30   ;;  %387 = vperm.xlu1 %1125, %v259_v31  }
  0x45   :  { %1132 = vset.pattern.permute.xlu0 %v1192_v10  ;;  %1126 = vset.pattern.permute.xlu1 %v1192_v10 }
  0x46   :  { %282 = vperm.xlu1 %1126, %v256_v32   ;;  %654 = vperm.xlu0 %1132, %v632_v43  }
  0x4a   :  { %1127 = vset.pattern.permute.xlu1 %v1191_v2  ;;  %669 = vperm.xlu0 %1132, %v635_v44  }
  0x4b   :  { %375 = vperm.xlu1 %1127, %v256_v32  }
  0x4e   :  { %679 = vperm.xlu0 %1132, %v637_v46  }
  0x4f   :  { %379 = vperm.xlu1 %1127, %v257_v29  }
  0x52   :  { %689 = vperm.xlu0 %1132, %v639_v47  }
  0x53   :  { %1128 = vset.pattern.permute.xlu1 %v1192_v10 }
  0x54   :  { %277 = vperm.xlu1 %1128, %v255_v33  }
  0x56   :  { %699 = vperm.xlu0 %1132, %v641_v49  }
  0x58   :  { %1130 = vset.pattern.permute.xlu1 %v1191_v2 }
  0x59   :  { %371 = vperm.xlu1 %1130, %v255_v33   ;;  %v850_v33 = vld [vmem:[%s1633_s5 + $0x58] sm:$0xff] }
  0x5a   :  { %709 = vperm.xlu0 %1132, %v1416_v51  }
  0x5d   :  { %1131 = vset.pattern.permute.xlu1 %v1192_v10 }
  0x5e   :  { %649 = vperm.xlu1 %1131, %v631_v34   ;;  %719 = vperm.xlu0 %1132, %v645_v52  }
  0x62   :  { %659 = vperm.xlu1 %1131, %v633_v35   ;;  %857 = vperm.xlu0 %1132, %v839_v54  }
  0x66   :  { %664 = vperm.xlu1 %1131, %v634_v36   ;;  %877 = vperm.xlu0 %1132, %v843_v56  }
  0x6a   :  { %674 = vperm.xlu1 %1131, %v636_v37   ;;  %892 = vperm.xlu0 %1132, %v846_v58  }
  0x6e   :  { %684 = vperm.xlu1 %1131, %v638_v38   ;;  %907 = vperm.xlu0 %1132, %v849_v61  }
  0x72   :  { %694 = vperm.xlu1 %1131, %v1368_v39   ;;  %1140 = vset.pattern.permute.xlu0 %v1191_v2 }
  0x73   :  { %744 = vperm.xlu0 %1140, %v631_v34  }
  0x76   :  { %704 = vperm.xlu1 %1131, %v1374_v40  }
  0x77   :  { %756 = vperm.xlu0 %1140, %v634_v36  }
  0x7a   :  { %714 = vperm.xlu1 %1131, %v1380_v41  }
  0x7b   :  { %764 = vperm.xlu0 %1140, %v636_v37  }
  0x7e   :  { %724 = vperm.xlu1 %1131, %v1386_v42   ;;  %v1405_v48 = vpop.permute.xlu1 %423 }
  0x7f   :  { %776 = vperm.xlu0 %1140, %v639_v47  }
  0x80   :  { %v1455_v1 = vpop.permute.xlu0 %415 }
  0x82   :  { %1133 = vset.pattern.permute.xlu1 %v1191_v2  ;;  %v1411_v50 = vpop.permute.xlu1 %427 }
  0x83   :  { %748 = vperm.xlu1 %1133, %v632_v43   ;;  %788 = vperm.xlu0 %1140, %v1374_v40  }
  0x84   :  { %v1462_v5 = vpop.permute.xlu0 %399 }
  0x87   :  { %752 = vperm.xlu1 %1133, %v633_v35   ;;  %v1422_v53 = vpop.permute.xlu1 %337  ;;  %800 = vperm.xlu0 %1140, %v645_v52  }
  0x88   :  { %v1470_v8 = vpop.permute.xlu0 %383 }
  0x8b   :  { %760 = vperm.xlu1 %1133, %v635_v44   ;;  %1143 = vset.pattern.permute.xlu0 %v1192_v10 }
  0x8c   :  { %v1427_v55 = vpop.permute.xlu1 %419  ;;  %922 = vperm.xlu0 %1143, %v852_v12  }
  0x8f   :  { %1134 = vset.pattern.permute.xlu1 %v1192_v10 }
  0x90   :  { %862 = vperm.xlu1 %1134, %v840_v57  }
  0x91   :  { %v1438_v59 = vpop.permute.xlu1 %322 }
  0x94   :  { %867 = vperm.xlu1 %1134, %v841_v60  }
  0x95   :  { %v343_v11 = vpop.permute.xlu0 %342 }
  0x96   :  { %v1449_v63 = vpop.permute.xlu1 %407 }
  0x98   :  { %872 = vperm.xlu1 %1134, %v842_v62  }
  0x99   :  { %v348_v17 = vpop.permute.xlu0 %347 }
  0x9a   :  { %v1452_v0 = vpop.permute.xlu1 %411 }
  0x9c   :  { %1135 = vset.pattern.permute.xlu1 %v1191_v2 }
  0x9d   :  { %768 = vperm.xlu1 %1135, %v637_v46   ;;  %v333_v23 = vpop.permute.xlu0 %332 }
  0x9f   :  { %v1457_v3 = vpop.permute.xlu1 %317 }
  0xa1   :  { %772 = vperm.xlu1 %1135, %v638_v38   ;;  %v328_v28 = vpop.permute.xlu0 %327  ;;  %v851_v38 = vld [vmem:[%s1633_s5 + $0x60] sm:$0xff] }
  0xa4   :  { %v1468_v7 = vpop.permute.xlu1 %403 }
  0xa5   :  { %1136 = vset.pattern.permute.xlu1 %v1192_v10  ;;  %v313_v34 = vpop.permute.xlu0 %312 }
  0xa6   :  { %882 = vperm.xlu1 %1136, %v844_v4  }
  0xa9   :  { %v1473_v9 = vpop.permute.xlu1 %302  ;;  %v308_v43 = vpop.permute.xlu0 %307 }
  0xaa   :  { %887 = vperm.xlu1 %1136, %v845_v6  }
  0xae   :  { %1137 = vset.pattern.permute.xlu1 %v1191_v2  ;;  %v1483_v14 = vpop.permute.xlu1 %391 }
  0xaf   :  { %780 = vperm.xlu1 %1137, %v1368_v39  }
  0xb2   :  { %v1498_v21 = vpop.permute.xlu1 %395 }
  0xb3   :  { %784 = vperm.xlu1 %1137, %v641_v49  }
  0xb7   :  { %1138 = vset.pattern.permute.xlu1 %v1192_v10  ;;  %v1502_v26 = vpop.permute.xlu1 %297 }
  0xb8   :  { %897 = vperm.xlu1 %1138, %v847_v16  }
  0xbc   :  { %902 = vperm.xlu1 %1138, %v848_v20   ;;  %v1507_v31 = vpop.permute.xlu1 %387 }
  0xc0   :  { %1139 = vset.pattern.permute.xlu1 %v1191_v2 }
  0xc1   :  { %792 = vperm.xlu1 %1139, %v1416_v51   ;;  %v283_v39 = vpop.permute.xlu1 %282 }
  0xc5   :  { %796 = vperm.xlu1 %1139, %v1380_v41  }
  0xc6   :  { %v376_v57 = vpop.permute.xlu1 %375 }
  0xc9   :  { %1141 = vset.pattern.permute.xlu1 %v1192_v10 }
  0xca   :  { %912 = vperm.xlu1 %1141, %v850_v33  }
  0xce   :  { %917 = vperm.xlu1 %1141, %v851_v38  }
  0xd2   :  { %1142 = vset.pattern.permute.xlu1 %v1191_v2 }
  0xd3   :  { %804 = vperm.xlu1 %1142, %v1386_v42   ;;  %v380_v42 = vpop.permute.xlu1 %379 }
  0xd7   :  { %1144 = vset.pattern.permute.xlu1 %v1192_v10 }
  0xe2   :  { %v1480_v13 = vpop.f32.mrf.mxu0 }
  0xe4   :  { %v1485_v15 = vpop.f32.mrf.mxu0 }
  0xe6   :  { %v1490_v18 = vpop.f32.mrf.mxu0 }
  0xe8   :  { %v1493_v19 = vpop.f32.mrf.mxu0 }
  0xea   :  { %v1068_v22 = vpop.f32.mrf.mxu0 }
  0xec   :  { %v1500_v24 = vpop.f32.mrf.mxu0 }
  0xee   :  { %v1069_v25 = vpop.f32.mrf.mxu0 }
  0xef   :  { %v357_v2 = vmul.f32 %v1069_v25, %v308_v43 }
  0xf0   :  { %v210_v27 = vpop.f32.mrf.mxu0 }
  0xf2   :  { %v1072_v29 = vpop.f32.mrf.mxu0 }
  0xf3   :  { %v360_v49 = vmul.f32 %v1072_v29, %v1438_v59  ;;  %v293_v59 = vpop.permute.xlu0 %292 }
  0xf4   :  { %v223_v30 = vpop.f32.mrf.mxu0 }
  0xf5   :  { %v358_v4 = vmul.f32 %v313_v34, %v223_v30 }
  0xf6   :  { %v1073_v32 = vpop.f32.mrf.mxu0 }
  0xf7   :  { %v361_v44 = vmul.f32 %v1073_v32, %v328_v28  ;;  %v438_v16 = vadd.f32 %v1462_v5, %v358_v4  ;;  %v288_v20 = vpop.permute.xlu0 %287  ;;  %v278_v5 = vpop.permute.xlu1 %277 }
  0xf8   :  { %v226_v35 = vpop.f32.mrf.mxu0  ;;  %v353_v29 = vmul.f32 %v1490_v18, %v288_v20 }
  0xf9   :  { %v441_v58 = vadd.f32 %v1452_v0, %v361_v44  ;;  %v359_v60 = vmul.f32 %v1457_v3, %v226_v35  ;;  %v853_v0 = vld [vmem:[%s1633_s5 + $0x70] sm:$0xff] }
  0xfa   :  { %v1076_v36 = vpop.f32.mrf.mxu0  ;;  %927 = vperm.xlu1 %1144, %v853_v0  }
  0xfb   :  { %v364_v37 = vmul.f32 %v1076_v36, %v343_v11  ;;  %v457_v11 = vmax.f32 %v441_v58, 0.0  ;;  %v439_v3 = vadd.f32 %v1468_v7, %v359_v60  ;;  %v437_v7 = vadd.f32 %v1498_v21, %v357_v2  ;;  %v273_v21 = vpop.permute.xlu0 %272 }
  0xfc   :  { %v239_v40 = vpop.f32.mrf.mxu0  ;;  %v350_v38 = vmul.f32 %v273_v21, %v1485_v15  ;;  %v1162_v15 = vld [vmem:[%s1631_s3 + $0x8] sm:$0xff]  }
  0xfd   :  { %v362_v41 = vmul.f32 %v333_v23, %v239_v40  ;;  %v444_v46 = vadd.f32 %v1405_v48, %v364_v37  ;;  %v355_v23 = vmul.f32 %v1502_v26, %v210_v27  ;;  %v455_v25 = vmax.f32 %v439_v3, 0.0  ;;  %v372_v37 = vpop.permute.xlu1 %371 }
  0xfe   :  { %v1077_v45 = vpop.f32.mrf.mxu0  ;;  %v453_v30 = vmax.f32 %v437_v7, 0.0  ;;  %v352_v26 = vmul.f32 %v1480_v13, %v283_v39 }
  0xff   :  { %v365_v47 = vmul.f32 %v1077_v45, %v348_v17  ;;  %v442_v52 = vadd.f32 %v1455_v1, %v362_v41  ;;  %v460_v61 = vmax.f32 %v444_v46, 0.0  ;;  %v440_v1 = vadd.f32 %v1449_v63, %v360_v49  ;;  %v854_v17 = vld [vmem:[%s1633_s5 + $0x78] sm:$0xff]  ;;  %v368_v40 = vpop.permute.xlu0 %367 }
 0x100   :  { %v242_v51 = vpop.f32.mrf.mxu0  ;;  %932 = vperm.xlu1 %1144, %v854_v17   ;;  %v435_v32 = vadd.f32 %v1507_v31, %v355_v23  ;;  %v432_v18 = vadd.f32 %v376_v57, %v352_v26  ;;  %v1164_v49 = vld [vmem:[%s1631_s3 + $0x18] sm:$0xff]  }
 0x101   :  { %v445_v54 = vadd.f32 %v1411_v50, %v365_v47  ;;  %v363_v56 = vmul.f32 %v1422_v53, %v242_v51  ;;  %v458_v50 = vmax.f32 %v442_v52, 0.0  ;;  %v456_v63 = vmax.f32 %v440_v1, 0.0  ;;  %v1163_v47 = vld [vmem:[%s1631_s3 + $0x10] sm:$0xff]   ;;  %v1165_v51 = vld [vmem:[%s1631_s3 + $0x20] sm:$0xff]   ;;  %v1166_v52 = vld [vmem:[%s1631_s3 + $0x28] sm:$0xff]   ;;  %v650_v57 = vpop.permute.xlu1 %649 }
 0x102   :  { %v451_v35 = vmax.f32 %v435_v32, 0.0  ;;  %v448_v39 = vmax.f32 %v432_v18, 0.0 }
 0x103   :  { %v461_v62 = vmax.f32 %v445_v54, 0.0  ;;  %v443_v48 = vadd.f32 %v1427_v55, %v363_v56  ;;  %v356_v55 = vmul.f32 %v1068_v22, %v1473_v9  ;;  %v467_v10 = vpack.c.bf16 %v457_v11, %v456_v63  ;;  %v1167_v54 = vld [vmem:[%s1631_s3 + $0x30] sm:$0xff]   ;;  %v1168_v56 = vld [vmem:[%s1631_s3 + $0x38] sm:$0xff]   ;;  %v655_v0 = vpop.permute.xlu0 %654 }
 0x104   :  { %v354_v9 = vmul.f32 %v293_v59, %v1500_v24  ;;  %v454_v22 = vmax.f32 %v438_v16, 0.0  ;;  %v351_v24 = vmul.f32 %v278_v5, %v1493_v19 }
 0x105   :  { %v459_v6 = vmax.f32 %v443_v48, 0.0  ;;  %v469_v53 = vpack.c.bf16 %v461_v62, %v460_v61  ;;  %v436_v28 = vadd.f32 %v1483_v14, %v356_v55  ;;  %v433_v14 = vadd.f32 %v380_v42, %v353_v29  ;;  %v660_v58 = vpop.permute.xlu1 %659 }
 0x106   :  { %v466_v33 = vpack.c.bf16 %v455_v25, %v454_v22  ;;  %v434_v34 = vadd.f32 %v1470_v8, %v354_v9  ;;  %v431_v43 = vadd.f32 %v372_v37, %v351_v24  ;;  %v430_v8 = vadd.f32 %v368_v40, %v350_v38 }
 0x107   :  { %1078 = vmatprep.subr.bf16.mxu1 %v469_v53  ;;  %v468_v12 = vpack.c.bf16 %v459_v6, %v458_v50  ;;  %v452_v27 = vmax.f32 %v436_v28, 0.0  ;;  %v449_v41 = vmax.f32 %v433_v14, 0.0  ;;  %v670_v11 = vpop.permute.xlu0 %669 }
 0x108   :  { %1079 = vmatpush3.bf16.msra.mxu1 %v469_v53  ;;  %v450_v31 = vmax.f32 %v434_v34, 0.0  ;;  %v447_v44 = vmax.f32 %v431_v43, 0.0  ;;  %v446_v19 = vmax.f32 %v430_v8, 0.0 }
 0x109   :  { %1080 = vmatprep.subr.bf16.mxu1 %v468_v12  ;;  %v465_v36 = vpack.c.bf16 %v453_v30, %v452_v27  ;;  %v463_v45 = vpack.c.bf16 %v449_v41, %v448_v39  ;;  %v665_v60 = vpop.permute.xlu1 %664 }
 0x10a   :  { %v464_v13 = vpack.c.bf16 %v451_v35, %v450_v31  ;;  %v462_v46 = vpack.c.bf16 %v447_v44, %v446_v19 }
 0x10c   :  { %1081 = vmatpush3.bf16.msra.mxu1 %v468_v12  ;;  %v680_v12 = vpop.permute.xlu0 %679 }
 0x10d   :  { %1082 = vmatprep.subr.bf16.mxu1 %v467_v10  ;;  %v1568_v61 = vpop.permute.xlu1 %674 }
 0x110   :  { %1083 = vmatpush3.bf16.msra.mxu1 %v467_v10  ;;  %v690_v55 = vpop.permute.xlu0 %689 }
 0x111   :  { %1084 = vmatprep.subr.bf16.mxu1 %v466_v33  ;;  %v685_v62 = vpop.permute.xlu1 %684 }
 0x114   :  { %1085 = vmatpush3.bf16.msra.mxu1 %v466_v33  ;;  %v1578_v16 = vpop.permute.xlu0 %699 }
 0x115   :  { %1086 = vmatprep.subr.bf16.mxu1 %v465_v36  ;;  %v1570_v48 = vpop.permute.xlu1 %694 }
 0x118   :  { %1087 = vmatpush3.bf16.msra.mxu1 %v465_v36  ;;  %v1580_v20 = vpop.permute.xlu0 %709 }
 0x119   :  { %1088 = vmatprep.subr.bf16.mxu1 %v464_v13  ;;  %v1572_v59 = vpop.permute.xlu1 %704 }
 0x11c   :  { %1089 = vmatpush3.bf16.msra.mxu1 %v464_v13  ;;  %v1584_v23 = vpop.permute.xlu0 %719 }
 0x11d   :  { %1090 = vmatprep.subr.bf16.mxu1 %v463_v45  ;;  %v1574_v1 = vpop.permute.xlu1 %714 }
 0x120   :  { %1091 = vmatpush3.bf16.msra.mxu1 %v463_v45  ;;  %v858_v10 = vpop.permute.xlu0 %857 }
 0x121   :  { %1092 = vmatprep.subr.bf16.mxu1 %v462_v46  ;;  %v1576_v4 = vpop.permute.xlu1 %724 }
 0x124   :  { %1093 = vmatpush3.bf16.msra.mxu1 %v462_v46  ;;  %v878_v9 = vpop.permute.xlu0 %877 }
 0x125   :  { %v749_v50 = vpop.permute.xlu1 %748 }
 0x127   :  { %1095 = vmatmul.mubr.bf16.vlgmr.msra.gmra.mxu1 %v1162_v15 }
 0x128   :  { %1098 = vmatprep.mubr.bf16.mxu1 %v1163_v47  ;;  %v1592_v5 = vpop.permute.xlu0 %892 }
 0x129   :  { %v753_v6 = vpop.permute.xlu1 %752 }
 0x12c   :  { %v1596_v30 = vpop.permute.xlu0 %907 }
 0x12d   :  { %v761_v53 = vpop.permute.xlu1 %760 }
 0x12f   :  { %1099 = vmatmul.mubr.bf16.gmra.mxu1 %v1164_v49 }
 0x130   :  { %1102 = vmatprep.mubr.bf16.mxu1 %v1165_v51  ;;  %v745_v33 = vpop.permute.xlu0 %744 }
 0x131   :  { %v863_v2 = vpop.permute.xlu1 %862 }
 0x134   :  { %v757_v37 = vpop.permute.xlu0 %756 }
 0x135   :  { %v868_v3 = vpop.permute.xlu1 %867 }
 0x137   :  { %1103 = vmatmul.mubr.bf16.gmra.mxu1 %v1166_v52 }
 0x138   :  { %1106 = vmatprep.mubr.bf16.mxu1 %v1167_v54  ;;  %v765_v46 = vpop.permute.xlu0 %764 }
 0x139   :  { %v873_v42 = vpop.permute.xlu1 %872 }
 0x13d   :  { %v769_v63 = vpop.permute.xlu1 %768 }
 0x13f   :  { %1107 = vmatmul.mubr.bf16.gmra.mxu1 %v1168_v56 }
 0x141   :  { %v773_v17 = vpop.permute.xlu1 %772 }
 0x145   :  { %v1582_v7 = vpop.permute.xlu1 %882 }
 0x149   :  { %v1586_v25 = vpop.permute.xlu1 %887 }
 0x14d   :  { %v1588_v28 = vpop.permute.xlu1 %780 }
 0x151   :  { %v1590_v22 = vpop.permute.xlu1 %784 }
 0x155   :  { %v1594_v29 = vpop.permute.xlu1 %897 }
 0x159   :  { %v1598_v32 = vpop.permute.xlu1 %902 }
 0x15d   :  { %v1600_v14 = vpop.permute.xlu1 %792 }
 0x161   :  { %v1602_v39 = vpop.permute.xlu1 %796 }
 0x1e7   :  { %v1096_v21 = vpop.f32.mrf.mxu1 }
 0x1e8   :  { %v729_v27 = vmul.f32 %v1096_v21, %v660_v58 }
 0x1e9   :  { %v568_v26 = vpop.f32.mrf.mxu1 }
 0x1ea   :  { %v727_v34 = vmul.f32 %v650_v57, %v568_v26  ;;  %v809_v38 = vadd.f32 %v753_v6, %v729_v27 }
 0x1eb   :  { %v1097_v24 = vpop.f32.mrf.mxu1 }
 0x1ec   :  { %v807_v35 = vadd.f32 %v745_v33, %v727_v34  ;;  %v730_v36 = vmul.f32 %v1097_v24, %v665_v60  ;;  %v825_v44 = vmax.f32 %v809_v38, 0.0 }
 0x1ed   :  { %v571_v18 = vpop.f32.mrf.mxu1 }
 0x1ee   :  { %v728_v31 = vmul.f32 %v655_v0, %v571_v18  ;;  %v823_v41 = vmax.f32 %v807_v35, 0.0  ;;  %v810_v43 = vadd.f32 %v757_v37, %v730_v36  ;;  %v937_v58 = vmul.f32 %v868_v3, %v825_v44  ;;  %v913_v0 = vpop.permute.xlu1 %912 }
 0x1ef   :  { %v1100_v40 = vpop.f32.mrf.mxu1 }
 0x1f0   :  { %v808_v13 = vadd.f32 %v749_v50, %v728_v31  ;;  %v733_v15 = vmul.f32 %v1100_v40, %v680_v12  ;;  %v935_v49 = vmul.f32 %v858_v10, %v823_v41  ;;  %v826_v51 = vmax.f32 %v810_v43, 0.0 }
 0x1f1   :  { %v584_v8 = vpop.f32.mrf.mxu1 }
 0x1f2   :  { %v824_v45 = vmax.f32 %v808_v13, 0.0  ;;  %v731_v19 = vmul.f32 %v670_v11, %v584_v8  ;;  %v813_v50 = vadd.f32 %v769_v63, %v733_v15  ;;  %v938_v26 = vmul.f32 %v873_v42, %v826_v51  ;;  %v777_v11 = vpop.permute.xlu0 %776  ;;  %v918_v63 = vpop.permute.xlu1 %917 }
 0x1f3   :  { %v1101_v47 = vpop.f32.mrf.mxu1 }
 0x1f4   :  { %v936_v52 = vmul.f32 %v863_v2, %v824_v45  ;;  %v811_v54 = vadd.f32 %v761_v53, %v731_v19  ;;  %v734_v56 = vmul.f32 %v1101_v47, %v685_v62  ;;  %v829_v53 = vmax.f32 %v813_v50, 0.0 }
 0x1f5   :  { %v587_v57 = vpop.f32.mrf.mxu1 }
 0x1f6   :  { %v951_v60 = vadd.f32 %v936_v52, %v935_v49  ;;  %v827_v6 = vmax.f32 %v811_v54, 0.0  ;;  %v732_v33 = vmul.f32 %v1568_v61, %v587_v57  ;;  %v814_v34 = vadd.f32 %v773_v17, %v734_v56  ;;  %v789_v40 = vpop.permute.xlu0 %788 }
 0x1f7   :  { %v1104_v21 = vpop.f32.mrf.mxu1 }
 0x1f8   :  { %v952_v27 = vadd.f32 %v951_v60, %v937_v58  ;;  %v812_v12 = vadd.f32 %v765_v46, %v732_v33  ;;  %v939_v10 = vmul.f32 %v878_v9, %v827_v6  ;;  %v737_v3 = vmul.f32 %v1104_v21, %v1578_v16 }
 0x1f9   :  { %v600_v24 = vpop.f32.mrf.mxu1  ;;  %v830_v38 = vmax.f32 %v814_v34, 0.0  ;;  %v941_v9 = vmul.f32 %v1586_v25, %v829_v53 }
 0x1fa   :  { %v953_v35 = vadd.f32 %v952_v27, %v938_v26  ;;  %v735_v2 = vmul.f32 %v690_v55, %v600_v24  ;;  %v828_v62 = vmax.f32 %v812_v12, 0.0  ;;  %v817_v41 = vadd.f32 %v1590_v22, %v737_v3  ;;  %v801_v51 = vpop.permute.xlu0 %800 }
 0x1fb   :  { %v1105_v36 = vpop.f32.mrf.mxu1  ;;  %v942_v8 = vmul.f32 %v1592_v5, %v830_v38 }
 0x1fc   :  { %v954_v37 = vadd.f32 %v953_v35, %v939_v10  ;;  %v815_v18 = vadd.f32 %v777_v11, %v735_v2  ;;  %v940_v61 = vmul.f32 %v1582_v7, %v828_v62  ;;  %v738_v42 = vmul.f32 %v1105_v36, %v1572_v59  ;;  %v805_v59 = vpop.permute.xlu1 %804 }
 0x1fd   :  { %v603_v31 = vpop.f32.mrf.mxu1  ;;  %v973_v36 = vstv %s1634_s6 }
 0x1fe   :  { %v736_v17 = vmul.f32 %v1570_v48, %v603_v31  ;;  %v955_v55 = vadd.f32 %v954_v37, %v940_v61  ;;  %v831_v43 = vmax.f32 %v815_v18, 0.0  ;;  %v818_v45 = vadd.f32 %v789_v40, %v738_v42  ;;  %v923_v33 = vpop.permute.xlu0 %922 }
 0x1ff   :  { %v1108_v16 = vpop.f32.mrf.mxu1  ;;  %v833_v48 = vmax.f32 %v817_v41, 0.0 }
 0x200   :  { %v816_v13 = vadd.f32 %v1588_v28, %v736_v17  ;;  %v956_v44 = vadd.f32 %v955_v55, %v941_v9  ;;  %v943_v15 = vmul.f32 %v1594_v29, %v831_v43  ;;  %v741_v47 = vmul.f32 %v1108_v16, %v1584_v23  ;;  %v928_v6 = vpop.permute.xlu1 %927 }
 0x201   :  { %v616_v7 = vpop.f32.mrf.mxu1  ;;  %v834_v52 = vmax.f32 %v818_v45, 0.0 }
 0x202   :  { %v832_v19 = vmax.f32 %v816_v13, 0.0  ;;  %v739_v46 = vmul.f32 %v1580_v20, %v616_v7  ;;  %v957_v25 = vadd.f32 %v956_v44, %v942_v8  ;;  %v945_v20 = vmul.f32 %v1596_v30, %v833_v48 }
 0x203   :  { %v1109_v22 = vpop.f32.mrf.mxu1  ;;  %v821_v29 = vadd.f32 %v801_v51, %v741_v47  ;;  %v946_v50 = vmul.f32 %v913_v0, %v834_v52 }
 0x204   :  { %v944_v49 = vmul.f32 %v1598_v32, %v832_v19  ;;  %v819_v28 = vadd.f32 %v1600_v14, %v739_v46  ;;  %v958_v5 = vadd.f32 %v957_v25, %v943_v15  ;;  %v742_v54 = vmul.f32 %v1109_v22, %v1576_v4 }
 0x205   :  { %v619_v56 = vpop.f32.mrf.mxu1  ;;  %v837_v27 = vmax.f32 %v821_v29, 0.0 }
 0x206   :  { %v740_v57 = vmul.f32 %v1574_v1, %v619_v56  ;;  %v959_v58 = vadd.f32 %v958_v5, %v944_v49  ;;  %v835_v60 = vmax.f32 %v819_v28, 0.0  ;;  %v822_v32 = vadd.f32 %v805_v59, %v742_v54  ;;  %v933_v1 = vpop.permute.xlu1 %932 }
 0x207   :  { %v949_v24 = vmul.f32 %v928_v6, %v837_v27 }
 0x208   :  { %v820_v23 = vadd.f32 %v1602_v39, %v740_v57  ;;  %v960_v14 = vadd.f32 %v959_v58, %v945_v20  ;;  %v947_v26 = vmul.f32 %v918_v63, %v835_v60  ;;  %v838_v34 = vmax.f32 %v822_v32, 0.0 }
 0x20a   :  { %v836_v21 = vmax.f32 %v820_v23, 0.0  ;;  %v961_v11 = vadd.f32 %v960_v14, %v946_v50  ;;  %v950_v10 = vmul.f32 %v933_v1, %v838_v34 }
 0x20c   :  { %v948_v4 = vmul.f32 %v923_v33, %v836_v21  ;;  %v962_v12 = vadd.f32 %v961_v11, %v947_v26 }
 0x20e   :  { %v963_v30 = vadd.f32 %v962_v12, %v948_v4 }
 0x210   :  { %v964_v35 = vadd.f32 %v963_v30, %v949_v24 }
 0x212   :  { %v965_v2 = vadd.f32 %v964_v35, %v950_v10 }
 0x214   :  { %v966_v53 = vrot.slane %v965_v2, 4 }
 0x216   :  { %v967_v62 = vadd.f32 %v966_v53, %v965_v2 }
 0x218   :  { %v968_v39 = vrot.slane %v967_v62, 2 }
 0x21a   :  { %v969_v0 = vadd.f32 %v968_v39, %v967_v62 }
 0x21c   :  { %v970_v3 = vrot.slane %v969_v0, 1 }
 0x21e   :  { %v971_v37 = vadd.f32 %v970_v3, %v969_v0 }
 0x220   :  { %v974_v18 = vadd.f32 %v973_v36, %v971_v37 }
 0x222   :  { %975 = vst [vmem:[#allocation3] sm:$0x1] %v974_v18 }
 0x223   :  { %1180 = shalt.err (!%p1177_p4)
}
 0x224   :  { %985 = dma.vmem_to_hbm [thread:$0]  %s983_s17, 16, %s1635_s7, [#allocation4]  }
 0x225   :  { %1189 = dma.done.wait [#allocation4], 16  }
 0x226   :  { %1190 = vsyncadd [#allocation4], 4294967280 }
 0x227   :  { %989 = vsyncpa [#allocation4], 1 }

</bundles_post_ra>
